<compile_context>
chip_gen: v7x
topology: tpu7x:2x2x1
jax: 0.10.0
libtpu: 0.0.40
codegen_flags: <defaults>
</compile_context>

<pallas_src>
import jax
import jax.numpy as jnp
from jax.experimental import pallas as pl
from jax.experimental.pallas import tpu as pltpu

LANE = 128
MAX_TILE_ROWS = 8192     # 8192 x 128 f32 = 4 MiB per operand per buffer
MIN_SPLIT_ROWS = 1024    # above this, force >= 2 grid steps (v7x dual-TC sharding)

_QSCALE = 255.0 / 4.0
_INV_QSCALE = 4.0 / 255.0


def _avg_quant_kernel(x1_ref, x2_ref, o_ref):
    # Reference-order math in f32: average (exact *0.5), quantize, dequantize.
    avg = (x1_ref[...].astype(jnp.float32)
           + x2_ref[...].astype(jnp.float32)) * 0.5
    o_ref[...] = (jnp.floor(avg * _QSCALE) * _INV_QSCALE).astype(o_ref.dtype)


def _pick_block_rows(rows: int) -> int:
    """Largest legal lane-dense block, but >=2 grid steps for medium+ sizes."""
    if rows <= MIN_SPLIT_ROWS:
        # Full-extent block: always layout-legal, single grid step.
        return rows
    # Split into at least two steps so "parallel" semantics can use both
    # TensorCores (v7x / megacore). Round to a sublane multiple of 8 so the
    # (non-full-extent) block shape is legal; partial last blocks are masked.
    half = ((pl.cdiv(rows, 2) + 7) // 8) * 8
    return min(MAX_TILE_ROWS, half)


def _run_slab(s1, s2, dtype):
    """Run the kernel on two (rows, 128) slabs, returning a (rows, 128) slab."""
    rows = s1.shape[0]
    block_rows = _pick_block_rows(rows)
    grid = (pl.cdiv(rows, block_rows),)
    blk = pl.BlockSpec((block_rows, LANE), lambda i: (i, 0))

    # VMEM budget: 3 operands x 2 pipeline buffers x block_bytes, plus margin.
    # At the 8192-row maximum this is ~26 MiB; we request 32 MiB, which fits
    # v5e/v6e (128 MiB physical) and v7x (64 MiB physical per TC) comfortably.
    block_bytes = block_rows * LANE * jnp.dtype(s1.dtype).itemsize
    vmem_limit = max(6 * block_bytes + (2 << 20), 32 << 20)

    return pl.pallas_call(
        _avg_quant_kernel,
        out_shape=jax.ShapeDtypeStruct((rows, LANE), dtype),
        grid=grid,
        in_specs=[blk, blk],
        out_specs=blk,
        compiler_params=pltpu.CompilerParams(
            dimension_semantics=("parallel",),
            vmem_limit_bytes=int(vmem_limit),
        ),
    )(s1, s2)


def _quant_jnp(a, b, dtype):
    avg = (a.astype(jnp.float32) + b.astype(jnp.float32)) * 0.5
    return (jnp.floor(avg * _QSCALE) * _INV_QSCALE).astype(dtype)


def avg_quant(xs):
    """xs: list/tuple of exactly two identically shaped (e.g. NCHW) arrays."""
    if not isinstance(xs, (list, tuple)) or len(xs) != 2:
        raise ValueError("AvgQuant expects a list/tuple of exactly two tensors.")
    x1, x2 = xs
    if x1.shape != x2.shape:
        raise ValueError("AvgQuant inputs must have identical shapes.")

    orig_shape = x1.shape
    dtype = x1.dtype
    total = int(x1.size)

    if total == 0:
        return jnp.zeros(orig_shape, dtype)

    aligned_rows = total // LANE
    rem = total - aligned_rows * LANE

    if rem == 0:
        # Common NCHW-feature-map case: free lane-dense reshape, no padding.
        out = _run_slab(x1.reshape(aligned_rows, LANE),
                        x2.reshape(aligned_rows, LANE), dtype)
        return out.reshape(orig_shape)

    # Ragged size: process the 128-aligned prefix with the kernel and the
    # <=127-element tail with plain jnp (no full-tensor pad copies).
    f1 = x1.reshape(-1)
    f2 = x2.reshape(-1)
    n_aligned = aligned_rows * LANE
    pieces = []
    if aligned_rows > 0:
        head = _run_slab(f1[:n_aligned].reshape(aligned_rows, LANE),
                         f2[:n_aligned].reshape(aligned_rows, LANE), dtype)
        pieces.append(head.reshape(-1))
    pieces.append(_quant_jnp(f1[n_aligned:], f2[n_aligned:], dtype))
    return jnp.concatenate(pieces).reshape(orig_shape)


def _reference(xs):
    x1, x2 = xs
    out = (x1 + x2) / 2.0
    return jnp.floor(out * _QSCALE) * _INV_QSCALE


def _check(shape, k1, k2):
    x1 = jax.random.uniform(k1, shape, dtype=jnp.float32)
    x2 = jax.random.uniform(k2, shape, dtype=jnp.float32)
    out = jax.block_until_ready(avg_quant([x1, x2]))
    ref = _reference([x1, x2])
    assert out.shape == shape
    diff = jnp.abs(out - ref)
    quant_step = 4.0 / 255.0
    # floor() is discontinuous: tolerate rare one-quant-step flips from
    # rounding-order differences, but require (near-)exact agreement elsewhere.
    assert float(jnp.max(diff)) <= quant_step + 1e-6, \
        f"max err {float(jnp.max(diff))} at shape {shape}"
    assert float(jnp.mean((diff > 1e-6).astype(jnp.float32))) < 0.01, \
        f"too many quantization-boundary mismatches at shape {shape}"


if __name__ == "__main__":
    key = jax.random.PRNGKey(0)
    k1, k2, k3, k4 = jax.random.split(key, 4)

    # Small NCHW feature maps consistent with the module's usage (aligned path).
    _check((2, 4, 16, 16), k1, k2)
    # Ragged size (total not a multiple of 128) exercises the prefix+tail path.
    _check((3, 5, 7, 11), k3, k4)

    print("KERNEL_OK")
</pallas_src>

<mosaic_0001>
module attributes {stable_mosaic.version = 11 : i64} {
  func.func @_avg_quant_kernel(%arg0: i32, %arg1: memref<16x128xf32, #tpu.memory_space<vmem>>, %arg2: memref<16x128xf32, #tpu.memory_space<vmem>>, %arg3: memref<16x128xf32, #tpu.memory_space<vmem>>) attributes {dimension_semantics = [#tpu.dimension_semantics<parallel>], iteration_bounds = array<i64: 1>, scalar_prefetch = 0 : i64, scratch_operands = 0 : i64, tpu.core_type = #tpu.core_type<tc>, window_params = [{transform_indices = @transform_0, window_bounds = array<i64: 16, 128>}, {transform_indices = @transform_1, window_bounds = array<i64: 16, 128>}, {transform_indices = @transform_2, window_bounds = array<i64: 16, 128>}]} {
    %c0 = arith.constant 0 : index
    %c0_0 = arith.constant 0 : index
    %0 = vector.load %arg1[%c0, %c0_0] : memref<16x128xf32, #tpu.memory_space<vmem>>, vector<16x128xf32>
    %c0_1 = arith.constant 0 : index
    %c0_2 = arith.constant 0 : index
    %1 = vector.load %arg2[%c0_1, %c0_2] : memref<16x128xf32, #tpu.memory_space<vmem>>, vector<16x128xf32>
    %2 = arith.addf %0, %1 : vector<16x128xf32>
    %cst = arith.constant 5.000000e-01 : f32
    %3 = vector.broadcast %cst : f32 to vector<16x128xf32>
    %4 = arith.mulf %2, %3 : vector<16x128xf32>
    %cst_3 = arith.constant 6.375000e+01 : f32
    %5 = vector.broadcast %cst_3 : f32 to vector<16x128xf32>
    %6 = arith.mulf %4, %5 : vector<16x128xf32>
    %7 = math.floor %6 : vector<16x128xf32>
    %cst_4 = arith.constant 0.0156862754 : f32
    %8 = vector.broadcast %cst_4 : f32 to vector<16x128xf32>
    %9 = arith.mulf %7, %8 : vector<16x128xf32>
    %c0_5 = arith.constant 0 : index
    %c0_6 = arith.constant 0 : index
    %10 = vector.load %arg3[%c0_5, %c0_6] : memref<16x128xf32, #tpu.memory_space<vmem>>, vector<16x128xf32>
    tpu.vector_store %arg3[%c0_5, %c0_6], %9 {strides = array<i32>} : memref<16x128xf32, #tpu.memory_space<vmem>>, vector<16x128xf32>,
    return
  }
  func.func @transform_0(%arg0: i32) -> (i32, i32) {
    %c0_i32 = arith.constant 0 : i32
    %c0_i32_0 = arith.constant 0 : i32
    return %arg0, %c0_i32 : i32, i32
  }
  func.func @transform_1(%arg0: i32) -> (i32, i32) {
    %c0_i32 = arith.constant 0 : i32
    %c0_i32_0 = arith.constant 0 : i32
    return %arg0, %c0_i32 : i32, i32
  }
  func.func @transform_2(%arg0: i32) -> (i32, i32) {
    %c0_i32 = arith.constant 0 : i32
    %c0_i32_0 = arith.constant 0 : i32
    return %arg0, %c0_i32 : i32, i32
  }
}

</mosaic_0001>

<bundles_post_ra>
// kernel: tpu_custom_call.1
= control target key start
LH: loop header
LB: loop body
LE: loop exit
PB: predicated region body
PF: predicated region fallthrough
CT: control target
= control target key end

     0   :  { %7 = vsyncpa [#allocation3], 0  ;;  %s216_s0 = inlined_call_operand.hbm [shape: f32[16,128], index: 0, kind: input, shape index: {}]   ;;  %s217_s1 = inlined_call_operand.hbm [shape: f32[16,128], index: 1, kind: input, shape index: {}]   ;;  %s218_s2 = inlined_call_operand.hbm [shape: f32[16,128], index: 2, kind: output, shape index: {}]  }
   0x1   :  { %8 = vsyncpa [#allocation6], 0 }
   0x2   :  { %9 = vsyncpa [#allocation4], 0  ;;  %s151_s9 = smov [#allocation2]   ;;  %s79_s13 = scalar_lea.hbm %s216_s0, 256 }
   0x3   :  { %s15_s10 = sshll.u32 %s151_s9, 4  ;;  %p80_p0 = scmp.ne.s32.totalorder %s216_s0, %s79_s13  ;;  %s16_s10 = int_to_ptr.vmem [resolvable:$true] %s15_s10 }
   0x4   :  { %p83_p1 = scmp.lt.u32.totalorder %s79_s13, %s216_s0 }
   0x6   :  { %p85_p2 = pnand %p83_p1, %p80_p0 }
   0x8   :  { %88 = shalt.err (!%p85_p2)
}
   0x9   :  { %s89_s18 = scalar_lea.vmem %s16_s10, 256  ;;  %p94_p4 = scmp.lt.s32.totalorder %s16_s10, %s16_s10 }
   0xa   :  { %p90_p3 = scmp.ne.s32.totalorder %s16_s10, %s89_s18  ;;  %p95_p5 = scmp.lt.s32.totalorder %s89_s18, %s89_s18 }
   0xc   :  { %p96_p6 = por %p95_p5, %p94_p4 }
   0xe   :  { %p97_p7 = pnand %p96_p6, %p90_p3 }
  0x10   :  { %100 = shalt.err (!%p97_p7)
}
  0x11   :  { %s152_s19 = smov 128   ;;  %s153_s20 = smov 8  }
  0x12   :  { %21 = dma.hbm_to_vmem [thread:$0]  %s216_s0, 256, %s16_s10, [#allocation3], %s152_s19, %s152_s19, %s153_s20  }
  0x13   :  { %s154_s23 = smov [#allocation5]   ;;  %s101_s27 = scalar_lea.hbm %s217_s1, 256 }
  0x14   :  { %s27_s24 = sshll.u32 %s154_s23, 4  ;;  %p102_p8 = scmp.ne.s32.totalorder %s217_s1, %s101_s27  ;;  %s28_s24 = int_to_ptr.vmem [resolvable:$true] %s27_s24 }
  0x15   :  { %p105_p9 = scmp.lt.u32.totalorder %s101_s27, %s217_s1 }
  0x17   :  { %p107_p10 = pnand %p105_p9, %p102_p8 }
  0x19   :  { %110 = shalt.err (!%p107_p10)
}
  0x1a   :  { %s111_s4 = scalar_lea.vmem %s28_s24, 256  ;;  %p116_p12 = scmp.lt.s32.totalorder %s28_s24, %s28_s24 }
  0x1b   :  { %p112_p11 = scmp.ne.s32.totalorder %s28_s24, %s111_s4  ;;  %p117_p13 = scmp.lt.s32.totalorder %s111_s4, %s111_s4 }
  0x1d   :  { %p118_p0 = por %p117_p13, %p116_p12 }
  0x1f   :  { %p119_p1 = pnand %p118_p0, %p112_p11 }
  0x21   :  { %122 = shalt.err (!%p119_p1)
}
  0x22   :  { %33 = dma.hbm_to_vmem [thread:$0]  %s217_s1, 256, %s28_s24, [#allocation6], %s152_s19, %s152_s19, %s153_s20  }
  0x23   :  { %145 = dma.done.wait [#allocation3], 256  }
  0x24   :  { %146 = vsyncadd [#allocation3], 4294967040 }
  0x25   :  { %147 = dma.done.wait [#allocation6], 256  }
  0x26   :  { %148 = vsyncadd [#allocation6], 4294967040  ;;  %v40_v0 = vld [vmem:[#allocation2] sm:$0xff]  ;;  %v42_v1 = vld [vmem:[#allocation5] sm:$0xff]  ;;  %s155_s6 = smov [#allocation7]  }
  0x27   :  { %v41_v2 = vld [vmem:[#allocation2 + $0x8] sm:$0xff]  ;;  %v44_v3 = vadd.f32 %v42_v1, %v40_v0  ;;  %v43_v4 = vld [vmem:[#allocation5 + $0x8] sm:$0xff]  ;;  %s61_s7 = sshll.u32 %s155_s6, 4  ;;  %s62_s7 = int_to_ptr.vmem [resolvable:$true] %s61_s7 }
  0x28   :  { %v45_v5 = vadd.f32 %v43_v4, %v41_v2  ;;  %s123_s1 = scalar_lea.vmem %s62_s7, 256  ;;  %p128_p3 = scmp.lt.s32.totalorder %s62_s7, %s62_s7 }
  0x29   :  { %v46_v6 = vmul.f32 0.5, %v44_v3  ;;  %p124_p2 = scmp.ne.s32.totalorder %s62_s7, %s123_s1  ;;  %p129_p4 = scmp.lt.s32.totalorder %s123_s1, %s123_s1 }
  0x2a   :  { %v47_v7 = vmul.f32 0.5, %v45_v5 }
  0x2b   :  { %v48_v8 = vmul.f32 63.75, %v46_v6  ;;  %p130_p5 = por %p129_p4, %p128_p3 }
  0x2c   :  { %v49_v9 = vmul.f32 63.75, %v47_v7 }
  0x2d   :  { %v50_v10 = vfloor.f32 %v48_v8  ;;  %p131_p6 = pnand %p130_p5, %p124_p2 }
  0x2e   :  { %v51_v11 = vfloor.f32 %v49_v9 }
  0x2f   :  { %v52_v12 = vmul.f32 0.015686275, %v50_v10 }
  0x30   :  { %v53_v13 = vmul.f32 0.015686275, %v51_v11 }
  0x31   :  { %54 = vst [vmem:[#allocation7] sm:$0xff] %v52_v12 }
  0x32   :  { %55 = vst [vmem:[#allocation7 + $0x8] sm:$0xff] %v53_v13 }
  0x33   :  { %134 = shalt.err (!%p131_p6)
}
  0x34   :  { %s135_s10 = scalar_lea.hbm %s218_s2, 256 }
  0x35   :  { %p136_p7 = scmp.ne.s32.totalorder %s218_s2, %s135_s10  ;;  %p139_p8 = scmp.lt.u32.totalorder %s135_s10, %s218_s2 }
  0x37   :  { %p141_p9 = pnand %p139_p8, %p136_p7 }
  0x39   :  { %144 = shalt.err (!%p141_p9)
}
  0x3a   :  { %67 = dma.vmem_to_hbm [thread:$0]  %s62_s7, 256, %s218_s2, [#allocation4], %s152_s19, %s152_s19, %s153_s20  }
  0x3b   :  { %149 = dma.done.wait [#allocation4], 256  }
  0x3c   :  { %150 = vsyncadd [#allocation4], 4294967040 }
  0x3d   :  { %71 = vsyncpa [#allocation3], 1 }
  0x3e   :  { %72 = vsyncpa [#allocation6], 1 }
  0x3f   :  { %73 = vsyncpa [#allocation4], 1 }

</bundles_post_ra>
